<compile_context>
chip_gen: v7x
topology: tpu7x:2x2x1
jax: 0.10.0
libtpu: 0.0.40
codegen_flags: <defaults>
</compile_context>

<pallas_src>
import jax
import jax.numpy as jnp
from jax.experimental import pallas as pl
from jax.experimental.pallas import tpu as pltpu

# ---------------- shapes (small, consistent with the wrapper) ----------------
N = 64        # number of nodes
F_IN = 16     # input feature dim
H = 32        # encoder hidden dim
P = 32        # projection dim
D_OUT = 16    # decoder output dim


def wrapper_kernel(adj_ref, x_ref, w_enc_ref, b_enc_ref, w_pd_ref, b_pd_ref, o_ref):
    # encoder: GCN layer  relu((adj @ x) @ W_enc + b_enc)
    agg = jnp.dot(adj_ref[...], x_ref[...], preferred_element_type=jnp.float32)
    h = jnp.dot(agg, w_enc_ref[...], preferred_element_type=jnp.float32) + b_enc_ref[...]
    h = jnp.maximum(h, 0.0)
    # projection + decoder fused into a single Linear (pre-folded in the wrapper).
    y = jnp.dot(h, w_pd_ref[...], preferred_element_type=jnp.float32) + b_pd_ref[...]
    # TODO(synk): nn.Dropout1d(ff_dropout) is declared in __init__ but never used in
    # forward (and is identity in eval); intentionally not applied.
    o_ref[...] = y.astype(o_ref.dtype)


def test_model_wrapper_forward(x, adj, params):
    w_enc, b_enc, w_proj, b_proj, w_dec, b_dec = params
    n, f_in = x.shape

    # Fold projection @ decoder at trace time (valid: no nonlinearity between them).
    w_pd = jnp.dot(w_proj, w_dec)            # (H, D_OUT)
    b_pd = jnp.dot(b_proj, w_dec) + b_dec    # (1, D_OUT)

    h_dim = w_enc.shape[1]
    d_out = w_dec.shape[1]

    # Single-step grid: entire problem (~20 KB) resident in VMEM, one kernel body run.
    return pl.pallas_call(
        wrapper_kernel,
        out_shape=jax.ShapeDtypeStruct((n, d_out), jnp.float32),
        grid_spec=pltpu.PrefetchScalarGridSpec(
            num_scalar_prefetch=0,
            grid=(1,),
            in_specs=[
                pl.BlockSpec((n, n), lambda i: (0, 0)),        # adj
                pl.BlockSpec((n, f_in), lambda i: (0, 0)),     # x
                pl.BlockSpec((f_in, h_dim), lambda i: (0, 0)), # W_enc
                pl.BlockSpec((1, h_dim), lambda i: (0, 0)),    # b_enc
                pl.BlockSpec((h_dim, d_out), lambda i: (0, 0)),# W_pd (fused proj@dec)
                pl.BlockSpec((1, d_out), lambda i: (0, 0)),    # b_pd
            ],
            out_specs=pl.BlockSpec((n, d_out), lambda i: (0, 0)),
        ),
        compiler_params=pltpu.CompilerParams(
            dimension_semantics=("arbitrary",),
            vmem_limit_bytes=2 * 1024 * 1024,
        ),
    )(adj, x, w_enc, b_enc, w_pd, b_pd)


def reference_forward(x, adj, params):
    w_enc, b_enc, w_proj, b_proj, w_dec, b_dec = params
    h = jnp.maximum(adj @ x @ w_enc + b_enc, 0.0)
    p = h @ w_proj + b_proj
    return p @ w_dec + b_dec


if __name__ == "__main__":
    key = jax.random.PRNGKey(0)
    kx, ka, k1, k2, k3, k4, k5, k6 = jax.random.split(key, 8)

    x = jax.random.normal(kx, (N, F_IN), dtype=jnp.float32)
    # symmetric row-normalized-ish adjacency (deterministic, synthetic)
    a = jax.random.uniform(ka, (N, N), dtype=jnp.float32)
    adj = (a + a.T) / (2.0 * N)

    # deterministic parameter init (synthetic; no checkpoint load)
    w_enc = jax.random.normal(k1, (F_IN, H), dtype=jnp.float32) * 0.1
    b_enc = jax.random.normal(k2, (1, H), dtype=jnp.float32) * 0.01
    w_proj = jax.random.normal(k3, (H, P), dtype=jnp.float32) * 0.1
    b_proj = jax.random.normal(k4, (1, P), dtype=jnp.float32) * 0.01
    w_dec = jax.random.normal(k5, (P, D_OUT), dtype=jnp.float32) * 0.1
    b_dec = jax.random.normal(k6, (1, D_OUT), dtype=jnp.float32) * 0.01
    params = (w_enc, b_enc, w_proj, b_proj, w_dec, b_dec)

    out = test_model_wrapper_forward(x, adj, params)
    out = jax.block_until_ready(out)

    ref = reference_forward(x, adj, params)
    assert out.shape == (N, D_OUT)
    assert jnp.allclose(out, ref, atol=1e-4, rtol=1e-4)

    print("KERNEL_OK")
</pallas_src>

<mosaic_0001>
module attributes {stable_mosaic.version = 11 : i64} {
  func.func @wrapper_kernel(%arg0: i32, %arg1: memref<64x64xf32, #tpu.memory_space<vmem>>, %arg2: memref<64x16xf32, #tpu.memory_space<vmem>>, %arg3: memref<16x32xf32, #tpu.memory_space<vmem>>, %arg4: memref<1x32xf32, #tpu.memory_space<vmem>>, %arg5: memref<32x16xf32, #tpu.memory_space<vmem>>, %arg6: memref<1x16xf32, #tpu.memory_space<vmem>>, %arg7: memref<64x16xf32, #tpu.memory_space<vmem>>) attributes {dimension_semantics = [#tpu.dimension_semantics<arbitrary>], iteration_bounds = array<i64: 1>, scalar_prefetch = 0 : i64, scratch_operands = 0 : i64, tpu.core_type = #tpu.core_type<tc>, window_params = [{pipeline_mode = #tpu.pipeline_mode<synchronous>, transform_indices = @transform_0, window_bounds = array<i64: 64, 64>}, {pipeline_mode = #tpu.pipeline_mode<synchronous>, transform_indices = @transform_1, window_bounds = array<i64: 64, 16>}, {pipeline_mode = #tpu.pipeline_mode<synchronous>, transform_indices = @transform_2, window_bounds = array<i64: 16, 32>}, {pipeline_mode = #tpu.pipeline_mode<synchronous>, transform_indices = @transform_3, window_bounds = array<i64: 1, 32>}, {pipeline_mode = #tpu.pipeline_mode<synchronous>, transform_indices = @transform_4, window_bounds = array<i64: 32, 16>}, {pipeline_mode = #tpu.pipeline_mode<synchronous>, transform_indices = @transform_5, window_bounds = array<i64: 1, 16>}, {pipeline_mode = #tpu.pipeline_mode<synchronous>, transform_indices = @transform_6, window_bounds = array<i64: 64, 16>}]} {
    %c0 = arith.constant 0 : index
    %c0_0 = arith.constant 0 : index
    %0 = vector.load %arg1[%c0, %c0_0] : memref<64x64xf32, #tpu.memory_space<vmem>>, vector<64x64xf32>
    %c0_1 = arith.constant 0 : index
    %c0_2 = arith.constant 0 : index
    %1 = vector.load %arg2[%c0_1, %c0_2] : memref<64x16xf32, #tpu.memory_space<vmem>>, vector<64x16xf32>
    %cst = arith.constant dense<0.000000e+00> : vector<64x16xf32>
    %2 = tpu.matmul %0, %1, %cst {dimension_numbers = #tpu.dot_dimension_numbers<[1], [0], [0], [1], [0, 0, 1, 1], [], []>} : vector<64x64xf32>, vector<64x16xf32>, vector<64x16xf32> -> vector<64x16xf32>
    %c0_3 = arith.constant 0 : index
    %c0_4 = arith.constant 0 : index
    %3 = vector.load %arg3[%c0_3, %c0_4] : memref<16x32xf32, #tpu.memory_space<vmem>>, vector<16x32xf32>
    %cst_5 = arith.constant dense<0.000000e+00> : vector<64x32xf32>
    %4 = tpu.matmul %2, %3, %cst_5 {dimension_numbers = #tpu.dot_dimension_numbers<[1], [0], [0], [1], [0, 0, 1, 1], [], []>} : vector<64x16xf32>, vector<16x32xf32>, vector<64x32xf32> -> vector<64x32xf32>
    %c0_6 = arith.constant 0 : index
    %c0_7 = arith.constant 0 : index
    %5 = vector.load %arg4[%c0_6, %c0_7] : memref<1x32xf32, #tpu.memory_space<vmem>>, vector<1x32xf32>
    %6 = vector.broadcast %5 : vector<1x32xf32> to vector<64x32xf32>
    %7 = arith.addf %4, %6 : vector<64x32xf32>
    %cst_8 = arith.constant 0.000000e+00 : f32
    %8 = vector.broadcast %cst_8 : f32 to vector<64x32xf32>
    %9 = arith.maximumf %7, %8 : vector<64x32xf32>
    %c0_9 = arith.constant 0 : index
    %c0_10 = arith.constant 0 : index
    %10 = vector.load %arg5[%c0_9, %c0_10] : memref<32x16xf32, #tpu.memory_space<vmem>>, vector<32x16xf32>
    %cst_11 = arith.constant dense<0.000000e+00> : vector<64x16xf32>
    %11 = tpu.matmul %9, %10, %cst_11 {dimension_numbers = #tpu.dot_dimension_numbers<[1], [0], [0], [1], [0, 0, 1, 1], [], []>} : vector<64x32xf32>, vector<32x16xf32>, vector<64x16xf32> -> vector<64x16xf32>
    %c0_12 = arith.constant 0 : index
    %c0_13 = arith.constant 0 : index
    %12 = vector.load %arg6[%c0_12, %c0_13] : memref<1x16xf32, #tpu.memory_space<vmem>>, vector<1x16xf32>
    %13 = vector.broadcast %12 : vector<1x16xf32> to vector<64x16xf32>
    %14 = arith.addf %11, %13 : vector<64x16xf32>
    %c0_14 = arith.constant 0 : index
    %c0_15 = arith.constant 0 : index
    %15 = vector.load %arg7[%c0_14, %c0_15] : memref<64x16xf32, #tpu.memory_space<vmem>>, vector<64x16xf32>
    tpu.vector_store %arg7[%c0_14, %c0_15], %14 {strides = array<i32>} : memref<64x16xf32, #tpu.memory_space<vmem>>, vector<64x16xf32>,
    return
  }
  func.func @transform_0(%arg0: i32) -> (i32, i32) {
    %c0_i32 = arith.constant 0 : i32
    %c0_i32_0 = arith.constant 0 : i32
    %c0_i32_1 = arith.constant 0 : i32
    return %c0_i32, %c0_i32_0 : i32, i32
  }
  func.func @transform_1(%arg0: i32) -> (i32, i32) {
    %c0_i32 = arith.constant 0 : i32
    %c0_i32_0 = arith.constant 0 : i32
    %c0_i32_1 = arith.constant 0 : i32
    return %c0_i32, %c0_i32_0 : i32, i32
  }
  func.func @transform_2(%arg0: i32) -> (i32, i32) {
    %c0_i32 = arith.constant 0 : i32
    %c0_i32_0 = arith.constant 0 : i32
    %c0_i32_1 = arith.constant 0 : i32
    return %c0_i32, %c0_i32_0 : i32, i32
  }
  func.func @transform_3(%arg0: i32) -> (i32, i32) {
    %c0_i32 = arith.constant 0 : i32
    %c0_i32_0 = arith.constant 0 : i32
    %c0_i32_1 = arith.constant 0 : i32
    return %c0_i32, %c0_i32_0 : i32, i32
  }
  func.func @transform_4(%arg0: i32) -> (i32, i32) {
    %c0_i32 = arith.constant 0 : i32
    %c0_i32_0 = arith.constant 0 : i32
    %c0_i32_1 = arith.constant 0 : i32
    return %c0_i32, %c0_i32_0 : i32, i32
  }
  func.func @transform_5(%arg0: i32) -> (i32, i32) {
    %c0_i32 = arith.constant 0 : i32
    %c0_i32_0 = arith.constant 0 : i32
    %c0_i32_1 = arith.constant 0 : i32
    return %c0_i32, %c0_i32_0 : i32, i32
  }
  func.func @transform_6(%arg0: i32) -> (i32, i32) {
    %c0_i32 = arith.constant 0 : i32
    %c0_i32_0 = arith.constant 0 : i32
    %c0_i32_1 = arith.constant 0 : i32
    return %c0_i32, %c0_i32_0 : i32, i32
  }
}

</mosaic_0001>

<bundles_post_ra>
// kernel: tpu_custom_call.1
= control target key start
LH: loop header
LB: loop body
LE: loop exit
PB: predicated region body
PF: predicated region fallthrough
CT: control target
= control target key end

     0   :  { %vm39_vm0 = vcmask 523264   ;;  %vm178_vm1 = vcmask 130048   ;;  %vm327_vm2 = vcmask 261120   ;;  %s788_s1 = inlined_call_operand.vmem [shape: f32[64,16], index: 1, kind: input, shape index: {}]   ;;  %s789_s0 = inlined_call_operand.vmem [shape: f32[64,64], index: 0, kind: input, shape index: {}]   ;;  %s790_s2 = inlined_call_operand.vmem [shape: f32[16,32], index: 2, kind: input, shape index: {}]   ;;  %s791_s4 = inlined_call_operand.vmem [shape: f32[32,16], index: 4, kind: input, shape index: {}]   ;;  %s792_s3 = inlined_call_operand.vmem [shape: f32[1,32], index: 3, kind: input, shape index: {}]   ;;  %s793_s5 = inlined_call_operand.vmem [shape: f32[1,16], index: 5, kind: input, shape index: {}]   ;;  %s794_s6 = inlined_call_operand.vmem [shape: f32[64,16], index: 6, kind: output, shape index: {}]  }
   0x1   :  { %v31_v0 = vld [vmem:[%s788_s1] sm:$0xff]  ;;  %v32_v1 = vld [vmem:[%s788_s1 + $0x8] sm:$0xff]  ;;  %v33_v2 = vld [vmem:[%s788_s1 + $0x10] sm:$0xff] }
   0x2   :  { %v597_v3 = vpack.c.bf16 %v32_v1, %v31_v0  ;;  %v34_v4 = vld [vmem:[%s788_s1 + $0x18] sm:$0xff]  ;;  %v35_v6 = vld [vmem:[%s788_s1 + $0x20] sm:$0xff]  ;;  %v36_v7 = vld [vmem:[%s788_s1 + $0x28] sm:$0xff] }
   0x3   :  { %v601_v5 = vpack.c.bf16 %v34_v4, %v33_v2  ;;  %v23_v8 = vld [vmem:[%s789_s0] sm:$0xff]  ;;  %v605_v9 = vpack.c.bf16 %v36_v7, %v35_v6  ;;  %v170_v11 = vld [vmem:[%s790_s2 + $0x8] sm:$0xff]  ;;  %v37_v12 = vld [vmem:[%s788_s1 + $0x30] sm:$0xff] }
   0x4   :  { %598 = vmatprep.subr.bf16.mxu0 %v597_v3  ;;  %549 = vmatprep.mubr.msk.f32.mxu0 %vm39_vm0, %v23_v8  ;;  %v169_v10 = vld [vmem:[%s790_s2] sm:$0xff]  ;;  %v38_v13 = vld [vmem:[%s788_s1 + $0x38] sm:$0xff]  ;;  %v24_v16 = vld [vmem:[%s789_s0 + $0x8] sm:$0xff] }
   0x5   :  { %600 = vmatpush3.bf16.msra.mxu0 %v597_v3  ;;  %v613_v14 = vpack.c.bf16 %v170_v11, %v169_v10  ;;  %v609_v15 = vpack.c.bf16 %v38_v13, %v37_v12  ;;  %v25_v17 = vld [vmem:[%s789_s0 + $0x10] sm:$0xff]  ;;  %v26_v18 = vld [vmem:[%s789_s0 + $0x18] sm:$0xff]  ;;  %v27_v19 = vld [vmem:[%s789_s0 + $0x20] sm:$0xff] }
   0x6   :  { %602 = vmatprep.subr.bf16.mxu0 %v601_v5  ;;  %v28_v20 = vld [vmem:[%s789_s0 + $0x28] sm:$0xff]  ;;  %v29_v21 = vld [vmem:[%s789_s0 + $0x30] sm:$0xff]  ;;  %v30_v22 = vld [vmem:[%s789_s0 + $0x38] sm:$0xff] }
   0x7   :  { %614 = vmatprep.subr.bf16.mxu1 %v613_v14  ;;  %v316_v23 = vld [vmem:[%s791_s4] sm:$0xff]  ;;  %v317_v24 = vld [vmem:[%s791_s4 + $0x8] sm:$0xff]  ;;  %v318_v26 = vld [vmem:[%s791_s4 + $0x10] sm:$0xff] }
   0x8   :  { %616 = vmatpush3.bf16.msra.mxu1 %v613_v14  ;;  %v617_v25 = vpack.c.bf16 %v317_v24, %v316_v23  ;;  %v319_v27 = vld [vmem:[%s791_s4 + $0x18] sm:$0xff]  ;;  %v477_v37 = vld [vmem:[%s792_s3] ss:$0 sm:$0xff] }
   0x9   :  { %604 = vmatpush3.bf16.msra.mxu0 %v601_v5  ;;  %v621_v30 = vpack.c.bf16 %v319_v27, %v318_v26  ;;  %v486_v62 = vld [vmem:[%s793_s5] ss:$0 sm:$0xff] }
   0xa   :  { %606 = vmatprep.subr.bf16.mxu0 %v605_v9  ;;  %618 = vmatprep.subr.bf16.mxu1 %v617_v25 }
   0xd   :  { %608 = vmatpush3.bf16.msra.mxu0 %v605_v9 }
   0xe   :  { %610 = vmatprep.subr.bf16.mxu0 %v609_v15 }
  0x11   :  { %612 = vmatpush3.bf16.msra.mxu0 %v609_v15 }
  0x14   :  { %550 = vmatmul.mubr.msk.f32.vlgmr.msra.gmra.mrb[0].mxu0 %vm39_vm0, %v24_v16 }
  0x15   :  { %552 = vmatprep.mubr.msk.f32.mxu0 %vm39_vm0, %v25_v17 }
  0x18   :  { %553 = vmatmul.mubr.msk.f32.gmra.mrb[2].mxu0 %vm39_vm0, %v26_v18 }
  0x19   :  { %555 = vmatprep.mubr.msk.f32.mxu0 %vm39_vm0, %v27_v19 }
  0x1c   :  { %556 = vmatmul.mubr.msk.f32.gmra.mrb[4].mxu0 %vm39_vm0, %v28_v20 }
  0x1d   :  { %558 = vmatprep.mubr.msk.f32.mxu0 %vm39_vm0, %v29_v21 }
  0x20   :  { %559 = vmatmul.mubr.msk.f32.gmra.mrb[6].mxu0 %vm39_vm0, %v30_v22 }
  0xe7   :  { %v551_v28 = vpop.f32.mrb[0].mxu0 }
  0xe8   :  { %v130_v29 = vpop.f32.mrb[1].mxu0 }
  0xe9   :  { %565 = vmatprep.mubr.msk.f32.mxu1 %vm178_vm1, %v130_v29 }
  0xea   :  { %566 = vmatmul.mubr.msk.f32.vlgmr.msra.gmra.mrb[0].mxu1 %vm178_vm1, %v551_v28 }
  0xeb   :  { %v554_v31 = vpop.f32.mrb[2].mxu0  ;;  %620 = vmatpush3.bf16.msra.mxu1 %v617_v25 }
  0xec   :  { %v140_v32 = vpop.f32.mrb[3].mxu0  ;;  %622 = vmatprep.subr.bf16.mxu1 %v621_v30 }
  0xed   :  { %568 = vmatprep.mubr.msk.f32.mxu1 %vm178_vm1, %v140_v32 }
  0xee   :  { %569 = vmatmul.mubr.msk.f32.gmra.mrb[2].mxu1 %vm178_vm1, %v554_v31 }
  0xef   :  { %v557_v33 = vpop.f32.mrb[4].mxu0  ;;  %624 = vmatpush3.bf16.msra.mxu1 %v621_v30 }
  0xf0   :  { %v150_v34 = vpop.f32.mrb[5].mxu0 }
  0xf1   :  { %571 = vmatprep.mubr.msk.f32.mxu1 %vm178_vm1, %v150_v34 }
  0xf2   :  { %572 = vmatmul.mubr.msk.f32.gmra.mrb[4].mxu1 %vm178_vm1, %v557_v33 }
  0xf3   :  { %v560_v35 = vpop.f32.mrb[6].mxu0 }
  0xf4   :  { %v160_v36 = vpop.f32.mrb[7].mxu0 }
  0xf5   :  { %574 = vmatprep.mubr.msk.f32.mxu1 %vm178_vm1, %v160_v36 }
  0xf6   :  { %575 = vmatmul.mubr.msk.f32.gmra.mrb[6].mxu1 %vm178_vm1, %v560_v35 }
 0x1bd   :  { %v567_v38 = vpop.f32.mrb[0].mxu1 }
 0x1be   :  { %v275_v39 = vadd.f32 %v567_v38, %v477_v37  ;;  %v269_v40 = vpop.f32.mrb[1].mxu1 }
 0x1bf   :  { %v270_v41 = vadd.f32 %v477_v37, %v269_v40 }
 0x1c0   :  { %v309_v44 = vmax.f32 %v275_v39, 0.0 }
 0x1c1   :  { %v308_v42 = vmax.f32 %v270_v41, 0.0  ;;  %v570_v43 = vpop.f32.mrb[2].mxu1 }
 0x1c2   :  { %v285_v45 = vadd.f32 %v570_v43, %v477_v37  ;;  %v279_v46 = vpop.f32.mrb[3].mxu1 }
 0x1c3   :  { %v280_v47 = vadd.f32 %v477_v37, %v279_v46  ;;  %585 = vmatprep.mubr.msk.f32.mxu1 %vm327_vm2, %v308_v42 }
 0x1c4   :  { %586 = vmatmul.mubr.msk.f32.vlgmr.msra.gmra.mrb[8].mxu1 %vm327_vm2, %v309_v44  ;;  %v311_v50 = vmax.f32 %v285_v45, 0.0 }
 0x1c5   :  { %v310_v48 = vmax.f32 %v280_v47, 0.0  ;;  %v573_v49 = vpop.f32.mrb[4].mxu1 }
 0x1c6   :  { %v295_v51 = vadd.f32 %v573_v49, %v477_v37  ;;  %v289_v52 = vpop.f32.mrb[5].mxu1 }
 0x1c7   :  { %v290_v53 = vadd.f32 %v477_v37, %v289_v52  ;;  %588 = vmatprep.mubr.msk.f32.mxu1 %vm327_vm2, %v310_v48 }
 0x1c8   :  { %589 = vmatmul.mubr.msk.f32.gmra.mrb[10].mxu1 %vm327_vm2, %v311_v50  ;;  %v313_v56 = vmax.f32 %v295_v51, 0.0 }
 0x1c9   :  { %v312_v54 = vmax.f32 %v290_v53, 0.0  ;;  %v576_v55 = vpop.f32.mrb[6].mxu1 }
 0x1ca   :  { %v305_v57 = vadd.f32 %v576_v55, %v477_v37  ;;  %v299_v58 = vpop.f32.mrb[7].mxu1 }
 0x1cb   :  { %v300_v59 = vadd.f32 %v477_v37, %v299_v58  ;;  %591 = vmatprep.mubr.msk.f32.mxu1 %vm327_vm2, %v312_v54 }
 0x1cc   :  { %592 = vmatmul.mubr.msk.f32.gmra.mrb[12].mxu1 %vm327_vm2, %v313_v56  ;;  %v315_v61 = vmax.f32 %v305_v57, 0.0 }
 0x1cd   :  { %v314_v60 = vmax.f32 %v300_v59, 0.0 }
 0x1cf   :  { %594 = vmatprep.mubr.msk.f32.mxu1 %vm327_vm2, %v314_v60 }
 0x1d0   :  { %595 = vmatmul.mubr.msk.f32.gmra.mrb[14].mxu1 %vm327_vm2, %v315_v61 }
 0x297   :  { %v587_v63 = vpop.f32.mrb[8].mxu1 }
 0x298   :  { %v424_v0 = vadd.f32 %v587_v63, %v486_v62  ;;  %v418_v1 = vpop.f32.mrb[9].mxu1 }
 0x299   :  { %v419_v2 = vadd.f32 %v486_v62, %v418_v1 }
 0x29a   :  { %458 = vst.msk [vmem:[%s794_s6 + $0x8] sm:$0xff] %vm178_vm1, %v424_v0 }
 0x29b   :  { %457 = vst.msk [vmem:[%s794_s6] sm:$0xff] %vm178_vm1, %v419_v2  ;;  %v590_v3 = vpop.f32.mrb[10].mxu1 }
 0x29c   :  { %v434_v4 = vadd.f32 %v590_v3, %v486_v62  ;;  %v428_v5 = vpop.f32.mrb[11].mxu1 }
 0x29d   :  { %v429_v6 = vadd.f32 %v486_v62, %v428_v5 }
 0x29e   :  { %460 = vst.msk [vmem:[%s794_s6 + $0x18] sm:$0xff] %vm178_vm1, %v434_v4 }
 0x29f   :  { %459 = vst.msk [vmem:[%s794_s6 + $0x10] sm:$0xff] %vm178_vm1, %v429_v6  ;;  %v593_v7 = vpop.f32.mrb[12].mxu1 }
 0x2a0   :  { %v444_v8 = vadd.f32 %v593_v7, %v486_v62  ;;  %v438_v9 = vpop.f32.mrb[13].mxu1 }
 0x2a1   :  { %v439_v10 = vadd.f32 %v486_v62, %v438_v9 }
 0x2a2   :  { %462 = vst.msk [vmem:[%s794_s6 + $0x28] sm:$0xff] %vm178_vm1, %v444_v8 }
 0x2a3   :  { %461 = vst.msk [vmem:[%s794_s6 + $0x20] sm:$0xff] %vm178_vm1, %v439_v10  ;;  %v596_v11 = vpop.f32.mrb[14].mxu1 }
 0x2a4   :  { %v454_v12 = vadd.f32 %v596_v11, %v486_v62  ;;  %v448_v13 = vpop.f32.mrb[15].mxu1 }
 0x2a5   :  { %v449_v14 = vadd.f32 %v486_v62, %v448_v13 }
 0x2a6   :  { %464 = vst.msk [vmem:[%s794_s6 + $0x38] sm:$0xff] %vm178_vm1, %v454_v12 }
 0x2a7   :  { %463 = vst.msk [vmem:[%s794_s6 + $0x30] sm:$0xff] %vm178_vm1, %v449_v14 }

</bundles_post_ra>
